<compile_context>
chip_gen: v6e
topology: v6e:2x2x1
jax: 0.10.0
libtpu: 0.0.40
codegen_flags: <defaults>
</compile_context>

<pallas_src>
import jax
import jax.numpy as jnp
from jax.experimental import pallas as pl
from jax.experimental.pallas import tpu as pltpu


def _round_up(x, m):
    return ((x + m - 1) // m) * m


def _mlp_kernel(x_ref, w1_ref, b1_ref, w2_ref, b2_ref, w3_ref, b3_ref, o_ref):
    # One batch tile per grid step; weights/biases are VMEM-resident across steps.
    x = x_ref[...].astype(jnp.bfloat16)          # in-kernel cast (f32 in HBM)

    h1 = jnp.dot(x, w1_ref[...], preferred_element_type=jnp.float32) + b1_ref[...]
    h1 = jnp.maximum(h1, 0.0).astype(jnp.bfloat16)

    h2 = jnp.dot(h1, w2_ref[...], preferred_element_type=jnp.float32) + b2_ref[...]
    h2 = jnp.maximum(h2, 0.0).astype(jnp.bfloat16)

    out = jnp.dot(h2, w3_ref[...], preferred_element_type=jnp.float32) + b3_ref[...]
    o_ref[...] = out.astype(o_ref.dtype)         # compact (tile_b, out_dim) store


def prepare_params(params):
    """One-time param prep (hoisted out of the per-call wrapper): bf16 matmul
    operands, f32 biases kept as (1, n) rows."""
    return dict(
        w1=params["w1"].astype(jnp.bfloat16), b1=params["b1"].astype(jnp.float32),
        w2=params["w2"].astype(jnp.bfloat16), b2=params["b2"].astype(jnp.float32),
        w3=params["w3"].astype(jnp.bfloat16), b3=params["b3"].astype(jnp.float32),
    )


def feed_forward_state(obs, prepared, batch_tile=4096):
    """Fused MLP forward. obs: (B, in_dim) float32. Returns (B, out_dim) float32.
    `prepared` must come from prepare_params()."""
    w1, b1 = prepared["w1"], prepared["b1"]
    w2, b2 = prepared["w2"], prepared["b2"]
    w3, b3 = prepared["w3"], prepared["b3"]

    B, in_dim = obs.shape
    out_dim = w3.shape[1]

    # --- batch tiling: multiple of 8 sublanes -------------------------------
    min_rows = 8
    b_rounded = _round_up(B, min_rows)
    tile_b = _round_up(min(batch_tile, b_rounded), min_rows)
    # v7x megacore: keep >= 2 grid steps when there is enough work for 2 cores.
    if b_rounded >= 2 * min_rows and pl.cdiv(b_rounded, tile_b) < 2:
        tile_b = _round_up(pl.cdiv(b_rounded, 2), min_rows)

    b_pad = _round_up(B, tile_b)
    obs_p = obs if b_pad == B else jnp.pad(obs, ((0, b_pad - B), (0, 0)))

    grid = (b_pad // tile_b,)

    def resident(a):
        # Constant index_map -> array stays in VMEM across all grid steps.
        return pl.BlockSpec(a.shape, lambda i: (0,) * a.ndim)

    out = pl.pallas_call(
        _mlp_kernel,
        out_shape=jax.ShapeDtypeStruct((b_pad, out_dim), jnp.float32),
        grid=grid,
        in_specs=[
            pl.BlockSpec((tile_b, in_dim), lambda i: (i, 0)),   # obs tile (f32)
            resident(w1), resident(b1),
            resident(w2), resident(b2),
            resident(w3), resident(b3),
        ],
        out_specs=pl.BlockSpec((tile_b, out_dim), lambda i: (i, 0)),
        compiler_params=pltpu.CompilerParams(
            dimension_semantics=("parallel",),
        ),
    )(obs_p, w1, b1, w2, b2, w3, b3)

    return out[:B] if b_pad != B else out


def init_params(key, in_dim, out_dim, hidden=64):
    """Deterministic init matching PyTorch Linear shapes (weights stored transposed)."""
    ks = jax.random.split(key, 6)

    def lin(kw, kb, fan_in, fan_out):
        bound = 1.0 / jnp.sqrt(fan_in)
        w = jax.random.uniform(kw, (fan_in, fan_out), jnp.float32, -bound, bound)
        b = jax.random.uniform(kb, (1, fan_out), jnp.float32, -bound, bound)
        return w, b

    w1, b1 = lin(ks[0], ks[1], in_dim, hidden)
    w2, b2 = lin(ks[2], ks[3], hidden, hidden)
    w3, b3 = lin(ks[4], ks[5], hidden, out_dim)
    return dict(w1=w1, b1=b1, w2=w2, b2=b2, w3=w3, b3=b3)


def _reference_bf16(obs, p):
    """Same math as the kernel (bf16 operands, f32 accumulation) in plain JAX."""
    x = obs.astype(jnp.bfloat16)
    h1 = jnp.dot(x, p["w1"].astype(jnp.bfloat16),
                 preferred_element_type=jnp.float32) + p["b1"]
    h1 = jnp.maximum(h1, 0.0).astype(jnp.bfloat16)
    h2 = jnp.dot(h1, p["w2"].astype(jnp.bfloat16),
                 preferred_element_type=jnp.float32) + p["b2"]
    h2 = jnp.maximum(h2, 0.0).astype(jnp.bfloat16)
    return jnp.dot(h2, p["w3"].astype(jnp.bfloat16),
                   preferred_element_type=jnp.float32) + p["b3"]


def _reference_f32(obs, p):
    h1 = jnp.maximum(obs @ p["w1"] + p["b1"], 0.0)
    h2 = jnp.maximum(h1 @ p["w2"] + p["b2"], 0.0)
    return h2 @ p["w3"] + p["b3"]


if __name__ == "__main__":
    key = jax.random.PRNGKey(0)
    k_obs, k_obs2, k_params = jax.random.split(key, 3)

    in_dim, out_dim = 32, 16
    params = init_params(k_params, in_dim, out_dim)
    prepared = prepare_params(params)          # one-time weight prep

    # Jit the wrapper so the (rare) row-pad fuses and dispatch overhead is amortized.
    ff = jax.jit(feed_forward_state, static_argnames=("batch_tile",))

    # Small case (single grid step).
    batch = 8
    obs = jax.random.normal(k_obs, (batch, in_dim), dtype=jnp.float32)
    out = jax.block_until_ready(ff(obs, prepared))
    assert out.shape == (batch, out_dim)
    assert jnp.allclose(out, _reference_bf16(obs, params), atol=1e-3, rtol=1e-3)
    assert jnp.allclose(out, _reference_f32(obs, params), atol=5e-2, rtol=5e-2)

    # Larger, non-tile-multiple batch (multi-step grid + row padding + 2-TC split).
    batch2 = 300
    obs2 = jax.random.normal(k_obs2, (batch2, in_dim), dtype=jnp.float32)
    out2 = jax.block_until_ready(ff(obs2, prepared, batch_tile=128))
    assert out2.shape == (batch2, out_dim)
    assert jnp.allclose(out2, _reference_bf16(obs2, params), atol=1e-3, rtol=1e-3)

    print("KERNEL_OK")
</pallas_src>

<mosaic_0001>
module attributes {stable_mosaic.version = 11 : i64} {
  func.func @_mlp_kernel(%arg0: i32, %arg1: memref<8x32xf32, #tpu.memory_space<vmem>>, %arg2: memref<32x64xbf16, #tpu.memory_space<vmem>>, %arg3: memref<1x64xf32, #tpu.memory_space<vmem>>, %arg4: memref<64x64xbf16, #tpu.memory_space<vmem>>, %arg5: memref<1x64xf32, #tpu.memory_space<vmem>>, %arg6: memref<64x16xbf16, #tpu.memory_space<vmem>>, %arg7: memref<1x16xf32, #tpu.memory_space<vmem>>, %arg8: memref<8x16xf32, #tpu.memory_space<vmem>>) attributes {dimension_semantics = [#tpu.dimension_semantics<parallel>], iteration_bounds = array<i64: 1>, scalar_prefetch = 0 : i64, scratch_operands = 0 : i64, tpu.core_type = #tpu.core_type<tc>, window_params = [{transform_indices = @transform_0, window_bounds = array<i64: 8, 32>}, {pipeline_mode = #tpu.pipeline_mode<synchronous>, transform_indices = @transform_1, window_bounds = array<i64: 32, 64>}, {pipeline_mode = #tpu.pipeline_mode<synchronous>, transform_indices = @transform_2, window_bounds = array<i64: 1, 64>}, {pipeline_mode = #tpu.pipeline_mode<synchronous>, transform_indices = @transform_3, window_bounds = array<i64: 64, 64>}, {pipeline_mode = #tpu.pipeline_mode<synchronous>, transform_indices = @transform_4, window_bounds = array<i64: 1, 64>}, {pipeline_mode = #tpu.pipeline_mode<synchronous>, transform_indices = @transform_5, window_bounds = array<i64: 64, 16>}, {pipeline_mode = #tpu.pipeline_mode<synchronous>, transform_indices = @transform_6, window_bounds = array<i64: 1, 16>}, {transform_indices = @transform_7, window_bounds = array<i64: 8, 16>}]} {
    %c0 = arith.constant 0 : index
    %c0_0 = arith.constant 0 : index
    %0 = vector.load %arg1[%c0, %c0_0] : memref<8x32xf32, #tpu.memory_space<vmem>>, vector<8x32xf32>
    %1 = arith.truncf %0 : vector<8x32xf32> to vector<8x32xbf16>
    %c0_1 = arith.constant 0 : index
    %c0_2 = arith.constant 0 : index
    %2 = vector.load %arg2[%c0_1, %c0_2] : memref<32x64xbf16, #tpu.memory_space<vmem>>, vector<32x64xbf16>
    %cst = arith.constant dense<0.000000e+00> : vector<8x64xf32>
    %3 = tpu.matmul %1, %2, %cst {dimension_numbers = #tpu.dot_dimension_numbers<[1], [0], [0], [1], [0, 0, 1, 1], [], []>} : vector<8x32xbf16>, vector<32x64xbf16>, vector<8x64xf32> -> vector<8x64xf32>
    %c0_3 = arith.constant 0 : index
    %c0_4 = arith.constant 0 : index
    %4 = vector.load %arg3[%c0_3, %c0_4] : memref<1x64xf32, #tpu.memory_space<vmem>>, vector<1x64xf32>
    %5 = vector.broadcast %4 : vector<1x64xf32> to vector<8x64xf32>
    %6 = arith.addf %3, %5 : vector<8x64xf32>
    %cst_5 = arith.constant 0.000000e+00 : f32
    %7 = vector.broadcast %cst_5 : f32 to vector<8x64xf32>
    %8 = arith.maximumf %6, %7 : vector<8x64xf32>
    %9 = arith.truncf %8 : vector<8x64xf32> to vector<8x64xbf16>
    %c0_6 = arith.constant 0 : index
    %c0_7 = arith.constant 0 : index
    %10 = vector.load %arg4[%c0_6, %c0_7] : memref<64x64xbf16, #tpu.memory_space<vmem>>, vector<64x64xbf16>
    %cst_8 = arith.constant dense<0.000000e+00> : vector<8x64xf32>
    %11 = tpu.matmul %9, %10, %cst_8 {dimension_numbers = #tpu.dot_dimension_numbers<[1], [0], [0], [1], [0, 0, 1, 1], [], []>} : vector<8x64xbf16>, vector<64x64xbf16>, vector<8x64xf32> -> vector<8x64xf32>
    %c0_9 = arith.constant 0 : index
    %c0_10 = arith.constant 0 : index
    %12 = vector.load %arg5[%c0_9, %c0_10] : memref<1x64xf32, #tpu.memory_space<vmem>>, vector<1x64xf32>
    %13 = vector.broadcast %12 : vector<1x64xf32> to vector<8x64xf32>
    %14 = arith.addf %11, %13 : vector<8x64xf32>
    %cst_11 = arith.constant 0.000000e+00 : f32
    %15 = vector.broadcast %cst_11 : f32 to vector<8x64xf32>
    %16 = arith.maximumf %14, %15 : vector<8x64xf32>
    %17 = arith.truncf %16 : vector<8x64xf32> to vector<8x64xbf16>
    %c0_12 = arith.constant 0 : index
    %c0_13 = arith.constant 0 : index
    %18 = vector.load %arg6[%c0_12, %c0_13] : memref<64x16xbf16, #tpu.memory_space<vmem>>, vector<64x16xbf16>
    %cst_14 = arith.constant dense<0.000000e+00> : vector<8x16xf32>
    %19 = tpu.matmul %17, %18, %cst_14 {dimension_numbers = #tpu.dot_dimension_numbers<[1], [0], [0], [1], [0, 0, 1, 1], [], []>} : vector<8x64xbf16>, vector<64x16xbf16>, vector<8x16xf32> -> vector<8x16xf32>
    %c0_15 = arith.constant 0 : index
    %c0_16 = arith.constant 0 : index
    %20 = vector.load %arg7[%c0_15, %c0_16] : memref<1x16xf32, #tpu.memory_space<vmem>>, vector<1x16xf32>
    %21 = vector.broadcast %20 : vector<1x16xf32> to vector<8x16xf32>
    %22 = arith.addf %19, %21 : vector<8x16xf32>
    %c0_17 = arith.constant 0 : index
    %c0_18 = arith.constant 0 : index
    %23 = vector.load %arg8[%c0_17, %c0_18] : memref<8x16xf32, #tpu.memory_space<vmem>>, vector<8x16xf32>
    tpu.vector_store %arg8[%c0_17, %c0_18], %22 {strides = array<i32>} : memref<8x16xf32, #tpu.memory_space<vmem>>, vector<8x16xf32>,
    return
  }
  func.func @transform_0(%arg0: i32) -> (i32, i32) {
    %c0_i32 = arith.constant 0 : i32
    %c0_i32_0 = arith.constant 0 : i32
    return %arg0, %c0_i32 : i32, i32
  }
  func.func @transform_1(%arg0: i32) -> (i32, i32) {
    %c0_i32 = arith.constant 0 : i32
    %c0_i32_0 = arith.constant 0 : i32
    %c0_i32_1 = arith.constant 0 : i32
    return %c0_i32, %c0_i32_0 : i32, i32
  }
  func.func @transform_2(%arg0: i32) -> (i32, i32) {
    %c0_i32 = arith.constant 0 : i32
    %c0_i32_0 = arith.constant 0 : i32
    %c0_i32_1 = arith.constant 0 : i32
    return %c0_i32, %c0_i32_0 : i32, i32
  }
  func.func @transform_3(%arg0: i32) -> (i32, i32) {
    %c0_i32 = arith.constant 0 : i32
    %c0_i32_0 = arith.constant 0 : i32
    %c0_i32_1 = arith.constant 0 : i32
    return %c0_i32, %c0_i32_0 : i32, i32
  }
  func.func @transform_4(%arg0: i32) -> (i32, i32) {
    %c0_i32 = arith.constant 0 : i32
    %c0_i32_0 = arith.constant 0 : i32
    %c0_i32_1 = arith.constant 0 : i32
    return %c0_i32, %c0_i32_0 : i32, i32
  }
  func.func @transform_5(%arg0: i32) -> (i32, i32) {
    %c0_i32 = arith.constant 0 : i32
    %c0_i32_0 = arith.constant 0 : i32
    %c0_i32_1 = arith.constant 0 : i32
    return %c0_i32, %c0_i32_0 : i32, i32
  }
  func.func @transform_6(%arg0: i32) -> (i32, i32) {
    %c0_i32 = arith.constant 0 : i32
    %c0_i32_0 = arith.constant 0 : i32
    %c0_i32_1 = arith.constant 0 : i32
    return %c0_i32, %c0_i32_0 : i32, i32
  }
  func.func @transform_7(%arg0: i32) -> (i32, i32) {
    %c0_i32 = arith.constant 0 : i32
    %c0_i32_0 = arith.constant 0 : i32
    return %arg0, %c0_i32 : i32, i32
  }
}

</mosaic_0001>

<bundles_post_ra>
// kernel: feed_forward_state.1
= control target key start
LH: loop header
LB: loop body
LE: loop exit
PB: predicated region body
PF: predicated region fallthrough
CT: control target
= control target key end

     0   :  { %12 = vsyncpa [#allocation3], 0  ;;  %s578_s0 = inlined_call_operand.hbm [shape: f32[8,32], index: 0, kind: input, shape index: {}]   ;;  %s579_s1 = inlined_call_operand.vmem [shape: bf16[32,64], index: 1, kind: input, shape index: {}]   ;;  %s580_s2 = inlined_call_operand.vmem [shape: f32[1,64], index: 2, kind: input, shape index: {}]   ;;  %s581_s3 = inlined_call_operand.vmem [shape: bf16[64,64], index: 3, kind: input, shape index: {}]   ;;  %s582_s4 = inlined_call_operand.hbm [shape: f32[1,64], index: 4, kind: input, shape index: {}]   ;;  %s583_s5 = inlined_call_operand.vmem [shape: bf16[64,16], index: 5, kind: input, shape index: {}]   ;;  %s584_s6 = inlined_call_operand.hbm [shape: f32[1,16], index: 6, kind: input, shape index: {}]   ;;  %s585_s7 = inlined_call_operand.hbm [shape: f32[8,16], index: 7, kind: output, shape index: {}]  }
   0x1   :  { %13 = vsyncpa [#allocation6], 0 }
   0x2   :  { %14 = vsyncpa [#allocation4], 0  ;;  %s482_s24 = smov [#allocation5]   ;;  %s483_s26 = smov [#allocation2]  }
   0x3   :  { %s37_s25 = sshll.u32 %s482_s24, 4  ;;  %s21_s27 = sshll.u32 %s483_s26, 4  ;;  %s38_s25 = int_to_ptr.vmem [resolvable:$true] %s37_s25  ;;  %s22_s27 = int_to_ptr.vmem [resolvable:$true] %s21_s27 }
   0x4   :  { %s404_s28 = scalar_lea.vmem %s38_s25, 16  ;;  %s408_s29 = scalar_lea.vmem %s38_s25, 32 }
   0x5   :  { %p405_p0 = scmp.ne.s32.totalorder %s38_s25, %s404_s28  ;;  %p409_p1 = scmp.lt.s32.totalorder %s38_s25, %s38_s25 }
   0x6   :  { %p410_p2 = scmp.lt.s32.totalorder %s408_s29, %s404_s28 }
   0x8   :  { %p411_p3 = por %p410_p2, %p409_p1 }
   0xa   :  { %p412_p4 = pnand %p411_p3, %p405_p0 }
   0xc   :  { %415 = shalt.err (!%p412_p4)
}
   0xd   :  { %40 = dma.hbm_to_vmem [thread:$0]  %s582_s4, 16, %s38_s25, [#allocation6]  }
   0xe   :  { %s424_s9 = scalar_lea.vmem %s22_s27, 128  ;;  %p429_p6 = scmp.lt.s32.totalorder %s22_s27, %s22_s27 }
   0xf   :  { %p425_p5 = scmp.ne.s32.totalorder %s22_s27, %s424_s9  ;;  %p430_p7 = scmp.lt.s32.totalorder %s424_s9, %s424_s9 }
  0x11   :  { %p431_p8 = por %p430_p7, %p429_p6 }
  0x13   :  { %p432_p9 = pnand %p431_p8, %p425_p5 }
  0x15   :  { %435 = shalt.err (!%p432_p9)
}
  0x16   :  { %24 = dma.hbm_to_vmem [thread:$0]  %s578_s0, 128, %s22_s27, [#allocation3]  }
  0x17   :  { %s484_s12 = smov [#allocation7]  }
  0x18   :  { %s49_s13 = sshll.u32 %s484_s12, 4  ;;  %s50_s13 = int_to_ptr.vmem [resolvable:$true] %s49_s13 }
  0x19   :  { %s444_s14 = scalar_lea.vmem %s50_s13, 16  ;;  %s448_s15 = scalar_lea.vmem %s50_s13, 32 }
  0x1a   :  { %p445_p10 = scmp.ne.s32.totalorder %s50_s13, %s444_s14  ;;  %p449_p11 = scmp.lt.s32.totalorder %s50_s13, %s50_s13 }
  0x1b   :  { %p450_p12 = scmp.lt.s32.totalorder %s448_s15, %s444_s14 }
  0x1d   :  { %p451_p13 = por %p450_p12, %p449_p11 }
  0x1f   :  { %p452_p0 = pnand %p451_p13, %p445_p10 }
  0x21   :  { %455 = shalt.err (!%p452_p0)
}
  0x22   :  { %52 = dma.hbm_to_vmem [thread:$0]  %s584_s6, 16, %s50_s13, [#allocation6]  }
  0x23   :  { %476 = dma.done.wait [#allocation3], 128  }
  0x24   :  { %477 = vsyncadd [#allocation3], 4294967168 }
  0x25   :  { %478 = dma.done.wait [#allocation6], 32  }
  0x26   :  { %479 = vsyncadd [#allocation6], 4294967264  ;;  %v485_v0 = vmov 0.0   ;;  %vm486_vm0 = vmmov 0   ;;  %v386_v1 = vld [vmem:[%s579_s1 + $0x8] sm:$0xff]   ;;  %v387_v2 = vld [vmem:[%s579_s1] sm:$0xff]  }
  0x27   :  { %348 = vmatprep.subr.bf16.mxu0 %v485_v0  ;;  %352 = vmatprep.mubr.msk.bf16.mxu0 %vm486_vm0, %v485_v0  ;;  %v63_v3 = vld [vmem:[#allocation2] sm:$0xff]  ;;  %v388_v4 = vld [vmem:[%s581_s3 + $0x18] sm:$0xff]   ;;  %vm88_vm1 = vcmask 261120   ;;  %v389_v5 = vld [vmem:[%s581_s3 + $0x10] sm:$0xff]   ;;  %vm173_vm2 = vcmask 523264   ;;  %vm301_vm3 = vcmask 130048  }
  0x28   :  { %356 = vmatprep.subr.bf16.mxu1 %v485_v0  ;;  %364 = vmatprep.mubr.msk.bf16.mxu1 %vm486_vm0, %v485_v0  ;;  %v64_v6 = vpack.c.bf16 %v63_v3, %v63_v3  ;;  %v390_v7 = vld [vmem:[%s581_s3 + $0x8] sm:$0xff]   ;;  %v391_v8 = vld [vmem:[%s581_s3] sm:$0xff]   ;;  %v392_v9 = vld [vmem:[%s583_s5 + $0x18] sm:$0xff]  }
  0x29   :  { %349 = vmatpush3.bf16.msra.mxu0 %v386_v1  ;;  %357 = vmatpush3.bf16.msra.mxu1 %v388_v4  ;;  %v393_v10 = vld [vmem:[%s583_s5 + $0x10] sm:$0xff]   ;;  %v319_v11 = vld [vmem:[%s580_s2] ss:$0 sm:$0xff]  ;;  %v394_v19 = vld [vmem:[%s583_s5 + $0x8] sm:$0xff]   ;;  %s487_s2 = smov [#allocation8]  }
  0x2a   :  { %350 = vmatprep.subr.bf16.mxu0 %v485_v0  ;;  %358 = vmatprep.subr.bf16.mxu1 %v485_v0  ;;  %v395_v20 = vld [vmem:[%s583_s5] sm:$0xff]   ;;  %v323_v21 = vld [vmem:[#allocation5] ss:$0 sm:$0xff]  ;;  %v329_v29 = vld [vmem:[#allocation7] ss:$0 sm:$0xff]  ;;  %s309_s12 = sshll.u32 %s487_s2, 4  ;;  %s310_s12 = int_to_ptr.vmem [resolvable:$true] %s309_s12 }
  0x2b   :  { %s456_s5 = scalar_lea.vmem %s310_s12, 128  ;;  %p461_p2 = scmp.lt.s32.totalorder %s310_s12, %s310_s12 }
  0x2c   :  { %p457_p1 = scmp.ne.s32.totalorder %s310_s12, %s456_s5  ;;  %p462_p3 = scmp.lt.s32.totalorder %s456_s5, %s456_s5 }
  0x2d   :  { %351 = vmatpush3.bf16.msra.mxu0 %v387_v2  ;;  %359 = vmatpush3.bf16.msra.mxu1 %v389_v5 }
  0x2e   :  { %368 = vmatprep.subr.bf16.mxu0 %v485_v0  ;;  %360 = vmatprep.subr.bf16.mxu1 %v485_v0  ;;  %p463_p4 = por %p462_p3, %p461_p2 }
  0x30   :  { %353 = vmatmul.mubr.msk.bf16.vlgmr.msra.gmra.mxu0 %vm88_vm1, %v64_v6  ;;  %p464_p5 = pnand %p463_p4, %p457_p1 }
  0x31   :  { %376 = vmatprep.mubr.msk.bf16.mxu0 %vm486_vm0, %v485_v0  ;;  %361 = vmatpush3.bf16.msra.mxu1 %v390_v7 }
  0x32   :  { %362 = vmatprep.subr.bf16.mxu1 %v485_v0  ;;  %369 = vmatpush3.bf16.msra.mxu0 %v392_v9 }
  0x33   :  { %370 = vmatprep.subr.bf16.mxu0 %v485_v0 }
  0x35   :  { %363 = vmatpush3.bf16.msra.mxu1 %v391_v8 }
  0x36   :  { %371 = vmatpush3.bf16.msra.mxu0 %v393_v10 }
  0x37   :  { %372 = vmatprep.subr.bf16.mxu0 %v485_v0 }
  0x3a   :  { %373 = vmatpush3.bf16.msra.mxu0 %v394_v19 }
  0x3b   :  { %374 = vmatprep.subr.bf16.mxu0 %v485_v0 }
  0x3e   :  { %375 = vmatpush3.bf16.msra.mxu0 %v395_v20 }
  0xf0   :  { %v126_v12 = vpop.f32.mrf.mxu0 }
  0xf1   :  { %v127_v13 = vadd.f32 %v319_v11, %v126_v12 }
  0xf2   :  { %v354_v14 = vpop.f32.mrf.mxu0 }
  0xf3   :  { %v132_v15 = vmax.f32 %v127_v13, 0.0 }
  0xf4   :  { %v129_v16 = vpop.f32.mrf.mxu0 }
  0xf5   :  { %v133_v17 = vpack.c.bf16 %v132_v15, %v132_v15 }
  0xf6   :  { %v355_v18 = vpop.f32.mrf.mxu0 }
  0xf7   :  { %365 = vmatmul.mubr.msk.bf16.vlgmr.msra.gmra.mxu1 %vm173_vm2, %v133_v17 }
 0x1b7   :  { %v211_v22 = vpop.f32.mrf.mxu1 }
 0x1b8   :  { %v212_v23 = vadd.f32 %v323_v21, %v211_v22 }
 0x1b9   :  { %v366_v24 = vpop.f32.mrf.mxu1 }
 0x1ba   :  { %v217_v25 = vmax.f32 %v212_v23, 0.0 }
 0x1bb   :  { %v214_v26 = vpop.f32.mrf.mxu1 }
 0x1bc   :  { %v218_v27 = vpack.c.bf16 %v217_v25, %v217_v25 }
 0x1bd   :  { %v367_v28 = vpop.f32.mrf.mxu1 }
 0x1be   :  { %377 = vmatmul.mubr.msk.bf16.vlgmr.msra.gmra.mxu0 %vm173_vm2, %v218_v27 }
 0x27e   :  { %v295_v30 = vpop.f32.mrf.mxu0 }
 0x27f   :  { %v296_v31 = vadd.f32 %v329_v29, %v295_v30 }
 0x280   :  { %v378_v32 = vpop.f32.mrf.mxu0 }
 0x281   :  { %302 = vst.msk [vmem:[#allocation8] sm:$0xff] %vm301_vm3, %v296_v31 }
 0x282   :  { %v298_v33 = vpop.f32.mrf.mxu0 }
 0x283   :  { %467 = shalt.err (!%p464_p5)
}
 0x284   :  { %312 = dma.vmem_to_hbm [thread:$0]  %s310_s12, 128, %s585_s7, [#allocation4]   ;;  %v379_v34 = vpop.f32.mrf.mxu0 }
 0x285   :  { %480 = dma.done.wait [#allocation4], 128  }
 0x286   :  { %481 = vsyncadd [#allocation4], 4294967168 }
 0x287   :  { %316 = vsyncpa [#allocation3], 1 }
 0x288   :  { %317 = vsyncpa [#allocation6], 1 }
 0x289   :  { %318 = vsyncpa [#allocation4], 1 }

</bundles_post_ra>
